<compile_context>
chip_gen: v7x
topology: tpu7x:2x2x1
jax: 0.10.0
libtpu: 0.0.40
codegen_flags: <defaults>
</compile_context>

<pallas_src>
import math
import functools

import jax
import jax.numpy as jnp
from jax.experimental import pallas as pl
from jax.experimental.pallas import tpu as pltpu


def _mha_kernel(q_ref, k_ref, v_ref, bias_ref,
                wq_ref, bq_ref, wk_ref, bk_ref, wv_ref, bv_ref,
                wp_ref, bp_ref, out_ref, acc_ref, *, scale):
    h = pl.program_id(2)

    @pl.when(h == 0)
    def _init():
        acc_ref[...] = jnp.zeros_like(acc_ref)

    q = q_ref[0]                      # (TS, E) bf16
    k = k_ref[0]                      # (T,  E) bf16
    v = v_ref[0]                      # (T,  E) bf16

    wq = wq_ref[0]                    # (E, hd) bf16
    wk = wk_ref[0]
    wv = wv_ref[0]
    wp = wp_ref[0]                    # (hd, E) bf16

    # Per-head projections: bf16 on the MXU, f32 accumulation, f32 bias adds.
    # Scale is folded into the query projection once (not per score tile).
    qh = (jnp.dot(q, wq, preferred_element_type=jnp.float32)
          + bq_ref[0]) * scale                                   # (TS, hd) f32
    kh = jnp.dot(k, wk, preferred_element_type=jnp.float32) + bk_ref[0]
    vh = jnp.dot(v, wv, preferred_element_type=jnp.float32) + bv_ref[0]

    # QK^T: contract last dims via dimension_numbers (no explicit transpose),
    # then add the precomputed additive mask bias.
    scores = jax.lax.dot_general(
        qh.astype(jnp.bfloat16), kh.astype(jnp.bfloat16),
        dimension_numbers=(((1,), (1,)), ((), ())),
        preferred_element_type=jnp.float32)                      # (TS, T)
    scores = scores + bias_ref[...]

    # Numerically-stable f32 softmax along T; reciprocal on the EUP.
    m = jnp.max(scores, axis=-1, keepdims=True)
    p = jnp.exp(scores - m)
    denom = jnp.sum(p, axis=-1, keepdims=True)
    attn = p * pl.reciprocal(denom, approx=True)

    ctx = jnp.dot(attn.astype(jnp.bfloat16), vh.astype(jnp.bfloat16),
                  preferred_element_type=jnp.float32)            # (TS, hd)

    # This head's slice of the output projection, accumulated in f32 scratch.
    # (Equivalent to concat(heads) @ Wp, without the concatenate.)
    acc_ref[...] += jnp.dot(ctx.astype(jnp.bfloat16), wp,
                            preferred_element_type=jnp.float32)  # (TS, E)

    @pl.when(h == pl.num_programs(2) - 1)
    def _finalize():
        out_ref[0] = (acc_ref[...] + bp_ref[...]).astype(out_ref.dtype)


def multi_head_attention(query, key, value, params, num_heads,
                         attn_mask=None, q_block=128):
    """query: (N,S,E), key/value: (N,T,E). Returns (N,S,E) float32."""
    N, S, E = query.shape
    _, T, _ = value.shape
    H = num_heads
    hd = E // H
    scale = 1.0 / math.sqrt(hd)

    wq, bq, wk, bk, wv, bv, wp, bp = params  # weights (E,E); biases (1,E)

    # Additive mask bias computed once: 0 where allowed, -1e9 where masked.
    if attn_mask is None:
        bias = jnp.zeros((S, T), dtype=jnp.float32)
    else:
        bias = jnp.where(attn_mask == 0, jnp.float32(-1e9),
                         jnp.float32(0.0)).astype(jnp.float32)

    # Host-side layout plumbing: per-head weight panels, bf16 for the MXU.
    def col_panels(w):   # (E, E) -> (H, E, hd): columns belonging to head h
        return w.reshape(E, H, hd).transpose(1, 0, 2).astype(jnp.bfloat16)

    def col_bias(b):     # (1, E) -> (H, 1, hd)
        return b.reshape(1, H, hd).transpose(1, 0, 2).astype(jnp.float32)

    wq3, wk3, wv3 = col_panels(wq), col_panels(wk), col_panels(wv)
    bq3, bk3, bv3 = col_bias(bq), col_bias(bk), col_bias(bv)
    wp3 = wp.reshape(H, hd, E).astype(jnp.bfloat16)   # rows belonging to head h
    bp2 = bp.astype(jnp.float32)                      # (1, E)

    qb = query.astype(jnp.bfloat16)
    kb = key.astype(jnp.bfloat16)
    vb = value.astype(jnp.bfloat16)

    # Query-tile axis so large S doesn't blow VMEM and the pipeline has work.
    ts = S if S <= q_block else q_block
    n_s = pl.cdiv(S, ts)

    kernel = functools.partial(_mha_kernel, scale=scale)

    out = pl.pallas_call(
        kernel,
        out_shape=jax.ShapeDtypeStruct((N, S, E), query.dtype),
        grid_spec=pltpu.PrefetchScalarGridSpec(
            num_scalar_prefetch=0,
            grid=(N, n_s, H),
            in_specs=[
                pl.BlockSpec((1, ts, E), lambda n, s, h: (n, s, 0)),  # query
                pl.BlockSpec((1, T, E), lambda n, s, h: (n, 0, 0)),   # key
                pl.BlockSpec((1, T, E), lambda n, s, h: (n, 0, 0)),   # value
                pl.BlockSpec((ts, T), lambda n, s, h: (s, 0)),        # mask bias
                pl.BlockSpec((1, E, hd), lambda n, s, h: (h, 0, 0)),  # Wq panel
                pl.BlockSpec((1, 1, hd), lambda n, s, h: (h, 0, 0)),  # bq
                pl.BlockSpec((1, E, hd), lambda n, s, h: (h, 0, 0)),  # Wk panel
                pl.BlockSpec((1, 1, hd), lambda n, s, h: (h, 0, 0)),  # bk
                pl.BlockSpec((1, E, hd), lambda n, s, h: (h, 0, 0)),  # Wv panel
                pl.BlockSpec((1, 1, hd), lambda n, s, h: (h, 0, 0)),  # bv
                pl.BlockSpec((1, hd, E), lambda n, s, h: (h, 0, 0)),  # Wp rows
                pl.BlockSpec((1, E), lambda n, s, h: (0, 0)),         # bp
            ],
            out_specs=pl.BlockSpec((1, ts, E), lambda n, s, h: (n, s, 0)),
            scratch_shapes=[pltpu.VMEM((ts, E), jnp.float32)],
        ),
        compiler_params=pltpu.CompilerParams(
            dimension_semantics=("parallel", "parallel", "arbitrary")),
    )(qb, kb, vb, bias, wq3, bq3, wk3, bk3, wv3, bv3, wp3, bp2)
    return out


def reference_mha(query, key, value, params, num_heads, attn_mask=None):
    """Pure-JAX f32 reference matching the PyTorch forward (eval-mode dropout)."""
    N, S, E = query.shape
    _, T, _ = value.shape
    hd = E // num_heads
    wq, bq, wk, bk, wv, bv, wp, bp = params
    q = query @ wq + bq[0]
    k = key @ wk + bk[0]
    v = value @ wv + bv[0]
    q = q.reshape(N, S, num_heads, hd).transpose(0, 2, 1, 3)
    k = k.reshape(N, T, num_heads, hd).transpose(0, 2, 1, 3)
    v = v.reshape(N, T, num_heads, hd).transpose(0, 2, 1, 3)
    align = jnp.einsum('nhsd,nhtd->nhst', q, k) / math.sqrt(hd)
    if attn_mask is not None:
        align = jnp.where(attn_mask == 0, -1e9, align)
    attn = jax.nn.softmax(align, axis=-1)
    y = jnp.einsum('nhst,nhtd->nhsd', attn, v)
    y = y.transpose(0, 2, 1, 3).reshape(N, S, E)
    return y @ wp + bp[0]


def init_params(key, embed_dim):
    ks = jax.random.split(key, 8)
    std = 1.0 / math.sqrt(embed_dim)
    params = []
    for i in range(4):  # query, key, value, proj
        w = jax.random.uniform(ks[2 * i], (embed_dim, embed_dim),
                               minval=-std, maxval=std, dtype=jnp.float32)
        b = jax.random.uniform(ks[2 * i + 1], (1, embed_dim),
                               minval=-std, maxval=std, dtype=jnp.float32)
        params += [w, b]
    return tuple(params)


if __name__ == "__main__":
    N, S, T, E, H = 2, 8, 8, 32, 2

    root = jax.random.PRNGKey(0)
    kq, kk, kv, kp = jax.random.split(root, 4)
    query = jax.random.normal(kq, (N, S, E), dtype=jnp.float32)
    key_in = jax.random.normal(kk, (N, T, E), dtype=jnp.float32)
    value = jax.random.normal(kv, (N, T, E), dtype=jnp.float32)
    params = init_params(kp, E)

    # Causal-ish mask (S, T): lower-triangular allowed.
    mask = jnp.tril(jnp.ones((S, T), dtype=jnp.float32))

    out = multi_head_attention(query, key_in, value, params, H, attn_mask=mask)
    out = jax.block_until_ready(out)

    ref = reference_mha(query, key_in, value, params, H, attn_mask=mask)
    assert out.shape == (N, S, E)
    # bf16 MXU matmuls (f32 accumulation) vs the f32 reference: allow ~1e-2
    # relative error.
    err = jnp.max(jnp.abs(out - ref))
    assert jnp.allclose(out, ref, atol=5e-2, rtol=5e-2), f"max abs err = {err}"

    print("KERNEL_OK")
</pallas_src>

<mosaic_0001>
module attributes {stable_mosaic.version = 11 : i64} {
  func.func @_mha_kernel(%arg0: i32, %arg1: i32, %arg2: i32, %arg3: memref<1x8x32xbf16, #tpu.memory_space<vmem>>, %arg4: memref<1x8x32xbf16, #tpu.memory_space<vmem>>, %arg5: memref<1x8x32xbf16, #tpu.memory_space<vmem>>, %arg6: memref<8x8xf32, #tpu.memory_space<vmem>>, %arg7: memref<1x32x16xbf16, #tpu.memory_space<vmem>>, %arg8: memref<1x1x16xf32, #tpu.memory_space<vmem>>, %arg9: memref<1x32x16xbf16, #tpu.memory_space<vmem>>, %arg10: memref<1x1x16xf32, #tpu.memory_space<vmem>>, %arg11: memref<1x32x16xbf16, #tpu.memory_space<vmem>>, %arg12: memref<1x1x16xf32, #tpu.memory_space<vmem>>, %arg13: memref<1x16x32xbf16, #tpu.memory_space<vmem>>, %arg14: memref<1x32xf32, #tpu.memory_space<vmem>>, %arg15: memref<1x8x32xf32, #tpu.memory_space<vmem>>, %arg16: memref<8x32xf32, #tpu.memory_space<vmem>>) attributes {dimension_semantics = [#tpu.dimension_semantics<parallel>, #tpu.dimension_semantics<parallel>, #tpu.dimension_semantics<arbitrary>], iteration_bounds = array<i64: 2, 1, 2>, scalar_prefetch = 0 : i64, scratch_operands = 1 : i64, tpu.core_type = #tpu.core_type<tc>, window_params = [{transform_indices = @transform_0, window_bounds = array<i64: 1, 8, 32>}, {transform_indices = @transform_1, window_bounds = array<i64: 1, 8, 32>}, {transform_indices = @transform_2, window_bounds = array<i64: 1, 8, 32>}, {transform_indices = @transform_3, window_bounds = array<i64: 8, 8>}, {transform_indices = @transform_4, window_bounds = array<i64: 1, 32, 16>}, {transform_indices = @transform_5, window_bounds = array<i64: 1, 1, 16>}, {transform_indices = @transform_6, window_bounds = array<i64: 1, 32, 16>}, {transform_indices = @transform_7, window_bounds = array<i64: 1, 1, 16>}, {transform_indices = @transform_8, window_bounds = array<i64: 1, 32, 16>}, {transform_indices = @transform_9, window_bounds = array<i64: 1, 1, 16>}, {transform_indices = @transform_10, window_bounds = array<i64: 1, 16, 32>}, {pipeline_mode = #tpu.pipeline_mode<synchronous>, transform_indices = @transform_11, window_bounds = array<i64: 1, 32>}, {transform_indices = @transform_12, window_bounds = array<i64: 1, 8, 32>}]} {
    %c0_i32 = arith.constant 0 : i32
    %0 = arith.cmpi eq, %arg2, %c0_i32 : i32
    %1 = arith.extui %0 : i1 to i32
    %c0_i32_0 = arith.constant 0 : i32
    %2 = arith.cmpi ne, %1, %c0_i32_0 : i32
    scf.if %2 {
      %cst_45 = arith.constant 0.000000e+00 : f32
      %60 = vector.broadcast %cst_45 : f32 to vector<8x32xf32>
      %c0_46 = arith.constant 0 : index
      %c0_47 = arith.constant 0 : index
      %61 = vector.load %arg16[%c0_46, %c0_47] : memref<8x32xf32, #tpu.memory_space<vmem>>, vector<8x32xf32>
      tpu.vector_store %arg16[%c0_46, %c0_47], %60 {strides = array<i32>} : memref<8x32xf32, #tpu.memory_space<vmem>>, vector<8x32xf32>,
    } else {
    }
    %c0 = arith.constant 0 : index
    %c0_1 = arith.constant 0 : index
    %c0_2 = arith.constant 0 : index
    %3 = vector.load %arg3[%c0, %c0_1, %c0_2] : memref<1x8x32xbf16, #tpu.memory_space<vmem>>, vector<1x8x32xbf16>
    %4 = vector.shape_cast %3 : vector<1x8x32xbf16> to vector<8x32xbf16>
    %c0_3 = arith.constant 0 : index
    %c0_4 = arith.constant 0 : index
    %c0_5 = arith.constant 0 : index
    %5 = vector.load %arg4[%c0_3, %c0_4, %c0_5] : memref<1x8x32xbf16, #tpu.memory_space<vmem>>, vector<1x8x32xbf16>
    %6 = vector.shape_cast %5 : vector<1x8x32xbf16> to vector<8x32xbf16>
    %c0_6 = arith.constant 0 : index
    %c0_7 = arith.constant 0 : index
    %c0_8 = arith.constant 0 : index
    %7 = vector.load %arg5[%c0_6, %c0_7, %c0_8] : memref<1x8x32xbf16, #tpu.memory_space<vmem>>, vector<1x8x32xbf16>
    %8 = vector.shape_cast %7 : vector<1x8x32xbf16> to vector<8x32xbf16>
    %c0_9 = arith.constant 0 : index
    %c0_10 = arith.constant 0 : index
    %c0_11 = arith.constant 0 : index
    %9 = vector.load %arg7[%c0_9, %c0_10, %c0_11] : memref<1x32x16xbf16, #tpu.memory_space<vmem>>, vector<1x32x16xbf16>
    %10 = vector.shape_cast %9 : vector<1x32x16xbf16> to vector<32x16xbf16>
    %c0_12 = arith.constant 0 : index
    %c0_13 = arith.constant 0 : index
    %c0_14 = arith.constant 0 : index
    %11 = vector.load %arg9[%c0_12, %c0_13, %c0_14] : memref<1x32x16xbf16, #tpu.memory_space<vmem>>, vector<1x32x16xbf16>
    %12 = vector.shape_cast %11 : vector<1x32x16xbf16> to vector<32x16xbf16>
    %c0_15 = arith.constant 0 : index
    %c0_16 = arith.constant 0 : index
    %c0_17 = arith.constant 0 : index
    %13 = vector.load %arg11[%c0_15, %c0_16, %c0_17] : memref<1x32x16xbf16, #tpu.memory_space<vmem>>, vector<1x32x16xbf16>
    %14 = vector.shape_cast %13 : vector<1x32x16xbf16> to vector<32x16xbf16>
    %c0_18 = arith.constant 0 : index
    %c0_19 = arith.constant 0 : index
    %c0_20 = arith.constant 0 : index
    %15 = vector.load %arg13[%c0_18, %c0_19, %c0_20] : memref<1x16x32xbf16, #tpu.memory_space<vmem>>, vector<1x16x32xbf16>
    %16 = vector.shape_cast %15 : vector<1x16x32xbf16> to vector<16x32xbf16>
    %cst = arith.constant dense<0.000000e+00> : vector<8x16xf32>
    %17 = tpu.matmul %4, %10, %cst {dimension_numbers = #tpu.dot_dimension_numbers<[1], [0], [0], [1], [0, 0, 1, 1], [], []>} : vector<8x32xbf16>, vector<32x16xbf16>, vector<8x16xf32> -> vector<8x16xf32>
    %c0_21 = arith.constant 0 : index
    %c0_22 = arith.constant 0 : index
    %c0_23 = arith.constant 0 : index
    %18 = vector.load %arg8[%c0_21, %c0_22, %c0_23] : memref<1x1x16xf32, #tpu.memory_space<vmem>>, vector<1x1x16xf32>
    %19 = vector.shape_cast %18 : vector<1x1x16xf32> to vector<1x16xf32>
    %20 = vector.broadcast %19 : vector<1x16xf32> to vector<8x16xf32>
    %21 = arith.addf %17, %20 : vector<8x16xf32>
    %cst_24 = arith.constant 2.500000e-01 : f32
    %22 = vector.broadcast %cst_24 : f32 to vector<8x16xf32>
    %23 = arith.mulf %21, %22 : vector<8x16xf32>
    %cst_25 = arith.constant dense<0.000000e+00> : vector<8x16xf32>
    %24 = tpu.matmul %6, %12, %cst_25 {dimension_numbers = #tpu.dot_dimension_numbers<[1], [0], [0], [1], [0, 0, 1, 1], [], []>} : vector<8x32xbf16>, vector<32x16xbf16>, vector<8x16xf32> -> vector<8x16xf32>
    %c0_26 = arith.constant 0 : index
    %c0_27 = arith.constant 0 : index
    %c0_28 = arith.constant 0 : index
    %25 = vector.load %arg10[%c0_26, %c0_27, %c0_28] : memref<1x1x16xf32, #tpu.memory_space<vmem>>, vector<1x1x16xf32>
    %26 = vector.shape_cast %25 : vector<1x1x16xf32> to vector<1x16xf32>
    %27 = vector.broadcast %26 : vector<1x16xf32> to vector<8x16xf32>
    %28 = arith.addf %24, %27 : vector<8x16xf32>
    %cst_29 = arith.constant dense<0.000000e+00> : vector<8x16xf32>
    %29 = tpu.matmul %8, %14, %cst_29 {dimension_numbers = #tpu.dot_dimension_numbers<[1], [0], [0], [1], [0, 0, 1, 1], [], []>} : vector<8x32xbf16>, vector<32x16xbf16>, vector<8x16xf32> -> vector<8x16xf32>
    %c0_30 = arith.constant 0 : index
    %c0_31 = arith.constant 0 : index
    %c0_32 = arith.constant 0 : index
    %30 = vector.load %arg12[%c0_30, %c0_31, %c0_32] : memref<1x1x16xf32, #tpu.memory_space<vmem>>, vector<1x1x16xf32>
    %31 = vector.shape_cast %30 : vector<1x1x16xf32> to vector<1x16xf32>
    %32 = vector.broadcast %31 : vector<1x16xf32> to vector<8x16xf32>
    %33 = arith.addf %29, %32 : vector<8x16xf32>
    %34 = arith.truncf %23 : vector<8x16xf32> to vector<8x16xbf16>
    %35 = arith.truncf %28 : vector<8x16xf32> to vector<8x16xbf16>
    %cst_33 = arith.constant dense<0.000000e+00> : vector<8x8xf32>
    %36 = tpu.matmul %34, %35, %cst_33 {dimension_numbers = #tpu.dot_dimension_numbers<[1], [1], [0], [0], [0, 0, 1, 0], [], []>} : vector<8x16xbf16>, vector<8x16xbf16>, vector<8x8xf32> -> vector<8x8xf32>
    %c0_34 = arith.constant 0 : index
    %c0_35 = arith.constant 0 : index
    %37 = vector.load %arg6[%c0_34, %c0_35] : memref<8x8xf32, #tpu.memory_space<vmem>>, vector<8x8xf32>
    %38 = arith.addf %36, %37 : vector<8x8xf32>
    %cst_36 = arith.constant dense<0xFF800000> : vector<8xf32>
    %39 = vector.multi_reduction <maximumf>, %38, %cst_36 [1] : vector<8x8xf32> to vector<8xf32>
    %40 = vector.shape_cast %39 : vector<8xf32> to vector<8x1xf32>
    %41 = vector.broadcast %40 : vector<8x1xf32> to vector<8x8xf32>
    %42 = arith.subf %38, %41 : vector<8x8xf32>
    %43 = math.exp %42 : vector<8x8xf32>
    %cst_37 = arith.constant dense<0.000000e+00> : vector<8xf32>
    %44 = vector.multi_reduction <add>, %43, %cst_37 [1] : vector<8x8xf32> to vector<8xf32>
    %45 = vector.shape_cast %44 : vector<8xf32> to vector<8x1xf32>
    %46 = tpu.reciprocal %45 {approx = true} : vector<8x1xf32> -> vector<8x1xf32>
    %47 = vector.broadcast %46 : vector<8x1xf32> to vector<8x8xf32>
    %48 = arith.mulf %43, %47 : vector<8x8xf32>
    %49 = arith.truncf %48 : vector<8x8xf32> to vector<8x8xbf16>
    %50 = arith.truncf %33 : vector<8x16xf32> to vector<8x16xbf16>
    %cst_38 = arith.constant dense<0.000000e+00> : vector<8x16xf32>
    %51 = tpu.matmul %49, %50, %cst_38 {dimension_numbers = #tpu.dot_dimension_numbers<[1], [0], [0], [1], [0, 0, 1, 1], [], []>} : vector<8x8xbf16>, vector<8x16xbf16>, vector<8x16xf32> -> vector<8x16xf32>
    %c0_39 = arith.constant 0 : index
    %c0_40 = arith.constant 0 : index
    %52 = vector.load %arg16[%c0_39, %c0_40] : memref<8x32xf32, #tpu.memory_space<vmem>>, vector<8x32xf32>
    %53 = arith.truncf %51 : vector<8x16xf32> to vector<8x16xbf16>
    %cst_41 = arith.constant dense<0.000000e+00> : vector<8x32xf32>
    %54 = tpu.matmul %53, %16, %cst_41 {dimension_numbers = #tpu.dot_dimension_numbers<[1], [0], [0], [1], [0, 0, 1, 1], [], []>} : vector<8x16xbf16>, vector<16x32xbf16>, vector<8x32xf32> -> vector<8x32xf32>
    %55 = arith.addf %52, %54 : vector<8x32xf32>
    %c0_42 = arith.constant 0 : index
    %c0_43 = arith.constant 0 : index
    %56 = vector.load %arg16[%c0_42, %c0_43] : memref<8x32xf32, #tpu.memory_space<vmem>>, vector<8x32xf32>
    tpu.vector_store %arg16[%c0_42, %c0_43], %55 {strides = array<i32>} : memref<8x32xf32, #tpu.memory_space<vmem>>, vector<8x32xf32>,
    %c1_i32 = arith.constant 1 : i32
    %57 = arith.cmpi eq, %arg2, %c1_i32 : i32
    %58 = arith.extui %57 : i1 to i32
    %c0_i32_44 = arith.constant 0 : i32
    %59 = arith.cmpi ne, %58, %c0_i32_44 : i32
    scf.if %59 {
      %c0_45 = arith.constant 0 : index
      %c0_46 = arith.constant 0 : index
      %60 = vector.load %arg16[%c0_45, %c0_46] : memref<8x32xf32, #tpu.memory_space<vmem>>, vector<8x32xf32>
      %c0_47 = arith.constant 0 : index
      %c0_48 = arith.constant 0 : index
      %61 = vector.load %arg14[%c0_47, %c0_48] : memref<1x32xf32, #tpu.memory_space<vmem>>, vector<1x32xf32>
      %62 = vector.broadcast %61 : vector<1x32xf32> to vector<8x32xf32>
      %63 = arith.addf %60, %62 : vector<8x32xf32>
      %c0_49 = arith.constant 0 : index
      %c0_50 = arith.constant 0 : index
      %c0_51 = arith.constant 0 : index
      %64 = vector.load %arg15[%c0_49, %c0_50, %c0_51] : memref<1x8x32xf32, #tpu.memory_space<vmem>>, vector<1x8x32xf32>
      %65 = vector.shape_cast %64 : vector<1x8x32xf32> to vector<8x32xf32>
      %66 = vector.shape_cast %63 : vector<8x32xf32> to vector<1x8x32xf32>
      tpu.vector_store %arg15[%c0_49, %c0_50, %c0_51], %66 {strides = array<i32>} : memref<1x8x32xf32, #tpu.memory_space<vmem>>, vector<1x8x32xf32>,
    } else {
    }
    return
  }
  func.func @transform_0(%arg0: i32, %arg1: i32, %arg2: i32) -> (i32, i32, i32) {
    %c0_i32 = arith.constant 0 : i32
    %c0_i32_0 = arith.constant 0 : i32
    return %arg0, %arg1, %c0_i32 : i32, i32, i32
  }
  func.func @transform_1(%arg0: i32, %arg1: i32, %arg2: i32) -> (i32, i32, i32) {
    %c0_i32 = arith.constant 0 : i32
    %c0_i32_0 = arith.constant 0 : i32
    %c0_i32_1 = arith.constant 0 : i32
    return %arg0, %c0_i32, %c0_i32_0 : i32, i32, i32
  }
  func.func @transform_2(%arg0: i32, %arg1: i32, %arg2: i32) -> (i32, i32, i32) {
    %c0_i32 = arith.constant 0 : i32
    %c0_i32_0 = arith.constant 0 : i32
    %c0_i32_1 = arith.constant 0 : i32
    return %arg0, %c0_i32, %c0_i32_0 : i32, i32, i32
  }
  func.func @transform_3(%arg0: i32, %arg1: i32, %arg2: i32) -> (i32, i32) {
    %c0_i32 = arith.constant 0 : i32
    %c0_i32_0 = arith.constant 0 : i32
    return %arg1, %c0_i32 : i32, i32
  }
  func.func @transform_4(%arg0: i32, %arg1: i32, %arg2: i32) -> (i32, i32, i32) {
    %c0_i32 = arith.constant 0 : i32
    %c0_i32_0 = arith.constant 0 : i32
    %c0_i32_1 = arith.constant 0 : i32
    return %arg2, %c0_i32, %c0_i32_0 : i32, i32, i32
  }
  func.func @transform_5(%arg0: i32, %arg1: i32, %arg2: i32) -> (i32, i32, i32) {
    %c0_i32 = arith.constant 0 : i32
    %c0_i32_0 = arith.constant 0 : i32
    %c0_i32_1 = arith.constant 0 : i32
    return %arg2, %c0_i32, %c0_i32_0 : i32, i32, i32
  }
  func.func @transform_6(%arg0: i32, %arg1: i32, %arg2: i32) -> (i32, i32, i32) {
    %c0_i32 = arith.constant 0 : i32
    %c0_i32_0 = arith.constant 0 : i32
    %c0_i32_1 = arith.constant 0 : i32
    return %arg2, %c0_i32, %c0_i32_0 : i32, i32, i32
  }
  func.func @transform_7(%arg0: i32, %arg1: i32, %arg2: i32) -> (i32, i32, i32) {
    %c0_i32 = arith.constant 0 : i32
    %c0_i32_0 = arith.constant 0 : i32
    %c0_i32_1 = arith.constant 0 : i32
    return %arg2, %c0_i32, %c0_i32_0 : i32, i32, i32
  }
  func.func @transform_8(%arg0: i32, %arg1: i32, %arg2: i32) -> (i32, i32, i32) {
    %c0_i32 = arith.constant 0 : i32
    %c0_i32_0 = arith.constant 0 : i32
    %c0_i32_1 = arith.constant 0 : i32
    return %arg2, %c0_i32, %c0_i32_0 : i32, i32, i32
  }
  func.func @transform_9(%arg0: i32, %arg1: i32, %arg2: i32) -> (i32, i32, i32) {
    %c0_i32 = arith.constant 0 : i32
    %c0_i32_0 = arith.constant 0 : i32
    %c0_i32_1 = arith.constant 0 : i32
    return %arg2, %c0_i32, %c0_i32_0 : i32, i32, i32
  }
  func.func @transform_10(%arg0: i32, %arg1: i32, %arg2: i32) -> (i32, i32, i32) {
    %c0_i32 = arith.constant 0 : i32
    %c0_i32_0 = arith.constant 0 : i32
    %c0_i32_1 = arith.constant 0 : i32
    return %arg2, %c0_i32, %c0_i32_0 : i32, i32, i32
  }
  func.func @transform_11(%arg0: i32, %arg1: i32, %arg2: i32) -> (i32, i32) {
    %c0_i32 = arith.constant 0 : i32
    %c0_i32_0 = arith.constant 0 : i32
    %c0_i32_1 = arith.constant 0 : i32
    return %c0_i32, %c0_i32_0 : i32, i32
  }
  func.func @transform_12(%arg0: i32, %arg1: i32, %arg2: i32) -> (i32, i32, i32) {
    %c0_i32 = arith.constant 0 : i32
    %c0_i32_0 = arith.constant 0 : i32
    return %arg0, %arg1, %c0_i32 : i32, i32, i32
  }
}

</mosaic_0001>

<bundles_post_ra>
// kernel: tpu_custom_call.1
= control target key start
LH: loop header
LB: loop body
LE: loop exit
PB: predicated region body
PF: predicated region fallthrough
CT: control target
= control target key end

     0   :  { %s1797_s0 = inlined_call_operand.vmem [shape: bf16[2,8,32], index: 0, kind: input, shape index: {}]   ;;  %s1798_s1 = inlined_call_operand.vmem [shape: bf16[2,8,32], index: 1, kind: input, shape index: {}]   ;;  %s1799_s2 = inlined_call_operand.vmem [shape: bf16[2,8,32], index: 2, kind: input, shape index: {}]   ;;  %s1800_s3 = inlined_call_operand.vmem [shape: f32[8,8], index: 3, kind: input, shape index: {}]   ;;  %s1801_s4 = inlined_call_operand.vmem [shape: bf16[2,32,16], index: 4, kind: input, shape index: {}]   ;;  %s1802_s5 = inlined_call_operand.vmem [shape: f32[2,1,16], index: 5, kind: input, shape index: {}]   ;;  %s1803_s6 = inlined_call_operand.vmem [shape: bf16[2,32,16], index: 6, kind: input, shape index: {}]   ;;  %s1804_s7 = inlined_call_operand.vmem [shape: f32[2,1,16], index: 7, kind: input, shape index: {}]   ;;  %s1805_s8 = inlined_call_operand.vmem [shape: bf16[2,32,16], index: 8, kind: input, shape index: {}]   ;;  %s1806_s9 = inlined_call_operand.vmem [shape: f32[2,1,16], index: 9, kind: input, shape index: {}]   ;;  %s1807_s10 = inlined_call_operand.vmem [shape: bf16[2,16,32], index: 10, kind: input, shape index: {}]   ;;  %s1808_s11 = inlined_call_operand.vmem [shape: f32[1,32], index: 11, kind: input, shape index: {}]   ;;  %s1809_s12 = inlined_call_operand.hbm [shape: f32[2,8,32], index: 12, kind: output, shape index: {}]  }
   0x1   :  { %1824 = sst [smem:[#allocation18_spill]] %s1798_s1 }
   0x2   :  { %1825 = sst [smem:[#allocation19_spill]] %s1800_s3 }
   0x3   :  { %1826 = sst [smem:[#allocation20_spill]] %s1801_s4 }
   0x4   :  { %1827 = sst [smem:[#allocation21_spill]] %s1808_s11 }
   0x5   :  { %1828 = sst [smem:[#allocation22_spill]] %s1809_s12 }
   0x6   :  { %17 = vsyncpa [#allocation4], 0 }
   0x7   :  { %19 = vsyncpa [#allocation4 + $0x1], 0  ;;  %s1562_s21 = smov 0   ;;  %s1564_s22 = smov 0  }
   0x8   :  { %s1566_s23 = smov 0   ;;  %s1568_s24 = smov 0  }
   0x9   :  { %s1570_s25 = smov 0   ;;  %s1572_s26 = smov 0  }
   0xa   :  { %s1574_s27 = smov 0   ;;  %s1576_s28 = smov 0  }
   0xb LB: > { %1829 = sst [smem:[#allocation6_spill]] %s1463_s21  ;;  %s1210_s29 = sadd.s32 4294967295, %s1491_s28   ;;  %s1491_s28 = sphi %s1576_s28, %s25_s28   ;;  %s1487_s27 = sphi %s1574_s27, %s1865_s27   ;;  %s1483_s26 = sphi %s1572_s26, %s1864_s26   ;;  %s1479_s25 = sphi %s1570_s25, %s1863_s25   ;;  %s1475_s24 = sphi %s1568_s24, %s1862_s24   ;;  %s1471_s23 = sphi %s1566_s23, %s1861_s23   ;;  %s1467_s22 = sphi %s1564_s22, %s1860_s22   ;;  %s1463_s21 = sphi %s1562_s21, %s1859_s21  }
   0xc   : > { %1830 = sst [smem:[#allocation7_spill]] %s1467_s22  ;;  %s1211_s30 = sadd.s32 4294967294, %s1491_s28  }
   0xd   : > { %1831 = sst [smem:[#allocation8_spill]] %s1471_s23  ;;  %s37_s13 = sadd.s32 1, %s1483_s26 }
   0xe   : > { %1832 = sst [smem:[#allocation9_spill]] %s1479_s25  ;;  %p38_p0 = scmp.ge.s32.totalorder %s37_s13, 2 }
   0xf   : > { %1833 = sst [smem:[#allocation10_spill]] %s1483_s26  ;;  %s44_s14 = sadd.s32 1, %s1487_s27 }
  0x10   : > { %1834 = sst [smem:[#allocation11_spill]] %s1487_s27  ;;  %p372_p1 = scmp.ne.s32.totalorder %s1471_s23, %s1467_s22 }
  0x11   : > { %1835 = sst [smem:[#allocation12_spill]] %s1491_s28  ;;  %p373_p2 = scmp.eq.s32.totalorder %s1210_s29, 3 }
  0x12   : > { %s1867_s13 = smov (%p38_p0, %s37_s13), 0  ;;  %s1869_s14 = smov (!%p38_p0, %s44_s14), %s1487_s27 }
  0x13   : > { %1836 = sst [smem:[#allocation13_spill]] %s1867_s13  ;;  %p1611_p3 = por %p373_p2, %p372_p1 }
  0x14   : > { %p378_p4 = scmp.ne.s32.totalorder %s1467_s22, %s1463_s21  ;;  %p46_p5 = scmp.ge.s32.totalorder %s1869_s14, 2 }
  0x15   : > { %s1837_s15 = scalar_select %p1611_p3, 1, 0 }
  0x16   : > { %p379_p6 = scmp.eq.s32.totalorder %s1211_s30, 3  ;;  %p1215_p7 = scmp.ge.s32.totalorder %s1491_s28, 1 }
  0x17   : > { %1838 = sst [smem:[#allocation14_spill]] %s1837_s15  ;;  %p481_p8 = scmp.lt.s32.totalorder %s1491_s28, 5 }
  0x18   : > { %s1871_s14 = smov (%p46_p5, %s1869_s14), 0  ;;  %p1621_p9 = por %p379_p6, %p378_p4 }
  0x19   : > { %1839 = sst [smem:[#allocation15_spill]] %s1871_s14  ;;  %p482_p10 = pnand %p1215_p7, %p481_p8 }
  0x1a   : > { %s1840_s16 = scalar_select %p1621_p9, 1, 0 }
  0x1b   : > { %s357_s17 = ssub.s32 %s1487_s27, %s1871_s14  ;;  %s362_s18 = sadd.s32 1, %s1471_s23 }
  0x1c   : > { %1841 = sst [smem:[#allocation16_spill]] %s1840_s16  ;;  %p360_p11 = scmp.eq.s32.totalorder %s357_s17, 0 }
  0x1d   : > { %485 = sbr.rel (%p482_p10) target bundleno = 1273 (0x4f9), region = 68  ;;  %s1811_s20 = sand.u32 (!%p482_p10), 1, %s1467_s22  }
  0x1e   : > { %s1629_s19 = scalar_select %p360_p11, %s1471_s23, %s362_s18  }
  0x1f   : > { %p566_p12 = scmp.lt.s32.totalorder (!%p482_p10), %s1479_s25, 1  ;;  %s1635_s29 = sshll.u32 (!%p482_p10), %s1811_s20, 3 }
  0x20   : > { %1842 = sst [smem:[#allocation17_spill]] %s1629_s19  ;;  %p585_p13 = scmp.lt.s32.totalorder (!%p482_p10), %s1475_s24, 1 }
  0x21   : > { %s1843_s1 = sld [smem:[#allocation18_spill]] (!%p482_p10)  ;;  %s1844_s4 = sld [smem:[#allocation20_spill]] (!%p482_p10) }
  0x22   : > { %s565_s11 = scalar_lea.vmem (!%p482_p10), [#allocation3], %s1635_s29  ;;  %p1228_p0 = scmp.ne.s32.totalorder (!%p482_p10), %s1475_s24, 0 }
  0x24   : > { %s567_s30 = scalar_select %p566_p12, %s1479_s25, 1 }
  0x25   : > { %s1640_s14 = scalar_select %p585_p13, %s1475_s24, 1 }
  0x26   : > { %s1642_s17 = sshll.u32 %s567_s30, 2  ;;  %618 = sbr.rel (%p1228_p0) target bundleno = 45 (0x2d), region = 72  ;;  %vm619_vm0 = vcmask (!%p1228_p0), 261120   ;;  %v1493_v0 = vmov (!%p1228_p0), 0.0  }
  0x27   : > { %s576_s19 = scalar_lea.vmem %s1843_s1, %s1642_s17  ;;  %s1251_s28 = sshll.u32 %s1640_s14, 4  ;;  %620 = vst.msk [vmem:[#allocation2] sm:$0xff] (!%p1228_p0), %vm619_vm0, %v1493_v0 }
  0x28   : > { %s589_s30 = scalar_lea.vmem %s1844_s4, %s1251_s28  ;;  %s597_s20 = scalar_lea.vmem %s1803_s6, %s1251_s28 }
  0x29   : > { %s600_s27 = scalar_lea.vmem %s1804_s7, %s1640_s14  ;;  %s1674_s16 = scalar_lea.vmem %s1805_s8, %s1251_s28 }
  0x2a   : > { %s608_s15 = scalar_lea.vmem %s1806_s9, %s1640_s14  ;;  %s1254_s4 = sshll.u32 %s1640_s14, 3 }
  0x2b   : > { %s1684_s13 = scalar_lea.vmem %s1807_s10, %s1254_s4 }
  0x2d PF: > { %v1386_v1 = vld [vmem:[%s597_s20] sm:$0xff]   ;;  %v1494_v2 = vmov 0.0   ;;  %v1388_v4 = vld [vmem:[%s597_s20 + $0x8] sm:$0xff]   ;;  %vm1495_vm1 = vmmov 0   ;;  %vm657_vm2 = vcmask 261120   ;;  %s1845_s4 = scalar_lea.vmem %s1797_s0, %s1642_s17  ;;  %vm829_vm3 = vcmask 130048  }
  0x2e   : > { %1278 = vmatprep.subr.bf16.mxu1 %v1494_v2  ;;  %1270 = vmatprep.subr.bf16.mxu0 %v1494_v2  ;;  %v1387_v3 = vld [vmem:[%s589_s30] sm:$0xff]   ;;  %v1389_v6 = vld [vmem:[%s589_s30 + $0x8] sm:$0xff]   ;;  %s1846_s30 = scalar_lea.vmem %s1802_s5, %s1640_s14  ;;  %s1848_s22 = sld [smem:[#allocation19_spill]]  ;;  %vm876_vm4 = vcmask 64512   ;;  %vm893_vm5 = vcmask 1043456  }
  0x2f   : > { %1279 = vmatpush3.bf16.msra.mxu1 %v1386_v1  ;;  %1282 = vmatprep.mubr.msk.bf16.mxu1 %vm1495_vm1, %v1494_v2  ;;  %v622_v5 = vld [vmem:[%s576_s19] sm:$0xf]  ;;  %v1391_v25 = vld [vmem:[%s1674_s16 + $0x8] sm:$0xff]   ;;  %p1245_p1 = scmp.ne.s32.totalorder %s1475_s24, 1 }
  0x30   : > { %1280 = vmatprep.subr.bf16.mxu1 %v1494_v2  ;;  %1271 = vmatpush3.bf16.msra.mxu0 %v1387_v3  ;;  %v621_v7 = vld [vmem:[%s1845_s4] sm:$0xf] }
  0x31   : > { %1272 = vmatprep.subr.bf16.mxu0 %v1494_v2  ;;  %1274 = vmatprep.mubr.msk.bf16.mxu0 %vm1495_vm1, %v1494_v2  ;;  %v1233_v8 = vld [vmem:[%s600_s27] ss:$0 sm:$0xff]  ;;  %s1847_s27 = scalar_lea.vmem %s1799_s2, %s1642_s17 }
  0x32   : > { %v1229_v9 = vld [vmem:[%s1846_s30] ss:$0 sm:$0xff] }
  0x33   : > { %1281 = vmatpush3.bf16.msra.mxu1 %v1388_v4  ;;  %v1390_v24 = vld [vmem:[%s1674_s16] sm:$0xff]  }
  0x34   : > { %1273 = vmatpush3.bf16.msra.mxu0 %v1389_v6  ;;  %1294 = vmatprep.subr.bf16.mxu1 %v1494_v2  ;;  %v623_v26 = vld [vmem:[%s1847_s27] sm:$0xf] }
  0x35   : > { %1286 = vmatprep.subr.bf16.mxu0 %v1494_v2  ;;  %v828_v27 = vld [vmem:[%s1848_s22] sm:$0xff] }
  0x36   : > { %1283 = vmatmul.mubr.msk.bf16.vlgmr.msra.gmra.mrb[0].mxu1 %vm657_vm2, %v622_v5  ;;  %v1237_v42 = vld [vmem:[%s608_s15] ss:$0 sm:$0xff]  ;;  %s1849_s15 = sld [smem:[#allocation21_spill]] (!%p1245_p1) }
  0x37   : > { %1275 = vmatmul.mubr.msk.bf16.vlgmr.msra.gmra.mrb[0].mxu0 %vm657_vm2, %v621_v7  ;;  %1296 = vmatprep.mubr.msk.bf16.mxu1 %vm1495_vm1, %v1494_v2  ;;  %v1392_v47 = vld [vmem:[%s1684_s13] sm:$0xff]  }
  0x38   : > { %1290 = vmatprep.mubr.msk.bf16.mxu0 %vm1495_vm1, %v1494_v2  ;;  %1287 = vmatpush3.bf16.msra.mxu0 %v1390_v24  ;;  %v937_v57 = vld [vmem:[#allocation2] sm:$0xff] }
  0x39   : > { %1288 = vmatprep.subr.bf16.mxu0 %v1494_v2 }
  0x3c   : > { %1289 = vmatpush3.bf16.msra.mxu0 %v1391_v25  ;;  %v1246_v0 = vld [vmem:[%s1849_s15] ss:$0 sm:$0xff] (!%p1245_p1) }
  0x3d   : > { %1300 = vmatprep.subr.bf16.mxu0 %v1494_v2 }
  0x3f   : > { %1291 = vmatmul.mubr.msk.bf16.vlgmr.msra.gmra.mrb[4].mxu0 %vm657_vm2, %v623_v26 }
  0x40   : > { %1302 = vmatprep.mubr.msk.bf16.mxu0 %vm1495_vm1, %v1494_v2 }
 0x109   : > { %v758_v10 = vpop.f32.mrb[0].mxu1 }
 0x10a   : > { %v759_v11 = vadd.f32 %v1233_v8, %v758_v10  ;;  %v1284_v12 = vpop.f32.mrb[1].mxu1  ;;  %v695_v13 = vpop.f32.mrb[0].mxu0 }
 0x10b   : > { %v761_v14 = vpop.f32.mrb[2].mxu1  ;;  %v696_v15 = vadd.f32 %v1229_v9, %v695_v13  ;;  %v1276_v16 = vpop.f32.mrb[1].mxu0 }
 0x10c   : > { %v827_v17 = vpack.c.bf16 %v759_v11, %v759_v11  ;;  %v1285_v18 = vpop.f32.mrb[3].mxu1  ;;  %v698_v19 = vpop.f32.mrb[2].mxu0 }
 0x10d   : > { %v1277_v20 = vpop.f32.mrb[3].mxu0  ;;  %v701_v22 = vmul.f32 0.25, %v696_v15 }
 0x10e   : > { %v834_v21 = vsel %vm829_vm3, %v827_v17, 0 }
 0x10f   : > { %1295 = vmatpush3.bf16.xpose.msra.mxu1 %v834_v21  ;;  %v826_v23 = vpack.c.bf16 %v701_v22, %v701_v22 }
 0x110   : > { %1306 = vmatprep.subr.bf16.mxu1 %v1494_v2 }
 0x112   : > { %v820_v39 = vpop.f32.mrb[4].mxu0 }
 0x113   : > { %v1292_v40 = vpop.f32.mrb[5].mxu0  ;;  %v821_v44 = vadd.f32 %v1237_v42, %v820_v39 }
 0x114   : > { %v823_v41 = vpop.f32.mrb[6].mxu0 }
 0x115   : > { %v1293_v43 = vpop.f32.mrb[7].mxu0  ;;  %v889_v45 = vpack.c.bf16 %v821_v44, %v821_v44 }
 0x116   : > { %1297 = vmatmul.mubr.msk.bf16.vlgmr.msra.gmra.mrb[4].mxu1 %vm829_vm3, %v826_v23 }
 0x117   : > { %1308 = vmatprep.mubr.msk.bf16.mxu1 %vm1495_vm1, %v1494_v2  ;;  %v895_v46 = vsel %vm893_vm5, %v889_v45, 0  ;;  %1307 = vmatpush3.bf16.msra.mxu1 %v1392_v47 }
 0x118   : > { %1301 = vmatpush3.bf16.msra.mxu0 %v895_v46 }
 0x1e9   : > { %v870_v28 = vpop.f32.mrb[4].mxu1 }
 0x1ea   : > { %v871_v29 = vadd.f32 %v870_v28, %v828_v27  ;;  %v1298_v30 = vpop.f32.mrb[5].mxu1 }
 0x1eb   : > { %v873_v31 = vpop.f32.mrb[6].mxu1 }
 0x1ec   : > { %v1299_v32 = vpop.f32.mrb[7].mxu1  ;;  %v877_v33 = vsel %vm876_vm4, %v871_v29, -inf }
 0x1ed   : > { %878 = vmax.xlane.f32.xlu0 %v877_v33 }
 0x27a   : > { %v879_v34 = vpop.xlane.xlu0 %878 }
 0x27b   : > { %v880_v35 = vsub.f32 %v871_v29, %v879_v34 }
 0x27d   : > { %v881_v36 = vmul.f32 1.442695, %v880_v35 }
 0x27f   : > { %1393 = vpow2.f32 %v881_v36 }
 0x289   : > { %v1394_v37 = vpop.eup %1393 }
 0x28a   : > { %v883_v38 = vsel %vm876_vm4, %v1394_v37, 0.0 }
 0x28b   : > { %884 = vadd.xlane.f32.xlu0 %v883_v38 }
 0x318   : > { %v885_v48 = vpop.xlane.xlu0 %884 }
 0x319   : > { %1395 = vrcp.f32 %v885_v48 }
 0x323   : > { %v1396_v49 = vpop.eup %1395 }
 0x324   : > { %v887_v50 = vmul.f32 %v1396_v49, %v1394_v37 }
 0x326   : > { %v888_v51 = vpack.c.bf16 %v887_v50, %v887_v50 }
 0x328   : > { %1303 = vmatmul.mubr.msk.bf16.vlgmr.msra.gmra.mrb[8].mxu0 %vm876_vm4, %v888_v51 }
 0x3fb   : > { %v931_v52 = vpop.f32.mrb[8].mxu0 }
 0x3fc   : > { %v938_v53 = vpack.c.bf16 %v931_v52, %v931_v52  ;;  %v1304_v54 = vpop.f32.mrb[9].mxu0 }
 0x3fd   : > { %v934_v55 = vpop.f32.mrb[10].mxu0 }
 0x3fe   : > { %v1305_v56 = vpop.f32.mrb[11].mxu0  ;;  %1309 = vmatmul.mubr.msk.bf16.vlgmr.msra.gmra.mrb[8].mxu1 %vm829_vm3, %v938_v53 }
 0x4ce   : > { %993 = sbr.rel (%p1245_p1) target bundleno = 1247 (0x4df), region = 76 }
 0x4d1   : > { %v982_v58 = vpop.f32.mrb[8].mxu1 }
 0x4d2   : > { %v988_v59 = vadd.f32 %v982_v58, %v937_v57  ;;  %v1310_v60 = vpop.f32.mrb[9].mxu1 }
 0x4d3   : > { %v985_v61 = vpop.f32.mrb[10].mxu1 }
 0x4d4   : > { %989 = vst.msk [vmem:[#allocation2] sm:$0xff] %vm657_vm2, %v988_v59  ;;  %v1311_v62 = vpop.f32.mrb[11].mxu1 }
 0x4db   : > { %v994_v63 = vld [vmem:[#allocation2] sm:$0xff] }
 0x4dc   : > { %v1002_v1 = vadd.f32 %v1246_v0, %v994_v63 }
 0x4de   : > { %1003 = vst.msk [vmem:[%s565_s11] sm:$0xff] %vm657_vm2, %v1002_v1 }
 0x4df PF: > { %s1850_s25 = sld [smem:[#allocation9_spill]]  ;;  %s1853_s24 = sld [smem:[#allocation22_spill]] }
 0x4e0   : > { %s1851_s1 = sld [smem:[#allocation7_spill]]  ;;  %s1019_s30 = sshll.u32 %s565_s11, 4  ;;  %s1020_s30 = int_to_ptr.vmem [resolvable:$true] %s1019_s30 }
 0x4e1   : > { %s1397_s27 = scalar_lea.vmem %s1020_s30, 128  ;;  %s1496_s23 = smov [#allocation3]  }
 0x4e2   : > { %p1398_p2 = scmp.ne.s32.totalorder %s1020_s30, %s1397_s27  ;;  %s1401_s12 = sshll.u32 %s1496_s23, 4  ;;  %s1402_s12 = int_to_ptr.vmem [resolvable:$false] %s1401_s12 }
 0x4e3   : > { %s1403_s22 = scalar_lea.vmem %s1402_s12, 256  ;;  %p1404_p6 = scmp.lt.s32.totalorder %s1020_s30, %s1402_s12 }
 0x4e4   : > { %p1399_p4 = pnand %p1398_p2, %p1611_p3  ;;  %p1405_p7 = scmp.lt.s32.totalorder %s1403_s22, %s1397_s27 }
 0x4e5   : > { %s1248_s4 = sshll.u32 %s1850_s25, 7  ;;  %s1854_s19 = smov %s1853_s24 }
 0x4e6   : > { %s1746_s20 = scalar_lea.hbm %s1853_s24, %s1248_s4  ;;  %s1855_s18 = sand.u32 1, %s1851_s1  }
 0x4e7   : > { %s1005_s26 = scalar_lea.sflag [#allocation4], %s1855_s18  ;;  %p1400_p5 = pneg %p1399_p4 }
 0x4e8   : > { %p1406_p8 = por %p1405_p7, %p1404_p6 }
 0x4ea   : > { %p1407_p10 = pnand %p1406_p8, %p1400_p5 }
 0x4ec   : > { %1410 = shalt.err (!%p1407_p10)
}
 0x4ed   : > { %s1411_s29 = scalar_lea.hbm %s1746_s20, 128  ;;  %s1415_s16 = scalar_lea.hbm %s1854_s19, 256 }
 0x4ee   : > { %p1412_p11 = scmp.ne.s32.totalorder %s1746_s20, %s1411_s29  ;;  %p1416_p0 = scmp.lt.u32.totalorder %s1746_s20, %s1854_s19 }
 0x4ef   : > { %p1417_p1 = scmp.lt.u32.totalorder %s1415_s16, %s1411_s29  ;;  %p1419_p4 = scmp.lt.u32.totalorder %s1411_s29, %s1746_s20 }
 0x4f0   : > { %p1413_p12 = pnand %p1412_p11, %p1611_p3 }
 0x4f1   : > { %p1418_p2 = por %p1417_p1, %p1416_p0 }
 0x4f2   : > { %p1414_p13 = pneg %p1413_p12 }
 0x4f3   : > { %p1420_p5 = por %p1419_p4, %p1418_p2 }
 0x4f5   : > { %p1421_p6 = pnand %p1420_p5, %p1414_p13 }
 0x4f7   : > { %1424 = shalt.err (!%p1421_p6)
}
 0x4f8   : > { %1312 = dma.vmem_to_hbm [thread:$0]  (%p1611_p3), %s1020_s30, 128, %s1746_s20, %s1005_s26  }
 0x4f9 PF: > { %s1856_s15 = sld [smem:[#allocation12_spill]]  ;;  %s1857_s25 = sld [smem:[#allocation6_spill]] }
 0x4ff   : > { %p1318_p7 = scmp.ge.s32.totalorder %s1856_s15, 2  ;;  %s1031_s4 = sand.u32 1, %s1857_s25  }
 0x500   : > { %s1032_s21 = scalar_lea.sflag [#allocation4], %s1031_s4 }
 0x501   : > { %p1315_p8 = pnand %p1318_p7, %p1621_p9 }
 0x503   : > { %1458 = dma.done.wait (!%p1315_p8), %s1032_s21, 128  }
 0x504   : > { %1460 = vsyncadd (!%p1315_p8), %s1032_s21, 4294967168  ;;  %s25_s28 = sadd.s32 1, %s1856_s15   ;;  %s1859_s21 = sld [smem:[#allocation7_spill]] }
 0x505   : > { %p22_p10 = scmp.ge.s32.totalorder %s25_s28, 6   ;;  %s1860_s22 = sld [smem:[#allocation8_spill]] }
 0x506   : > { %s1861_s23 = sld [smem:[#allocation17_spill]]  ;;  %s1862_s24 = sld [smem:[#allocation10_spill]] }
 0x507   : > { %s1863_s25 = sld [smem:[#allocation11_spill]]  ;;  %s1864_s26 = sld [smem:[#allocation13_spill]] }
 0x508   : > { %s1865_s27 = sld [smem:[#allocation15_spill]]  ;;  %24 = sbr.rel (!%p22_p10) target bundleno = 11 (0xb), region = 141 }
 0x50f   :  { %1037 = vsyncpa [#allocation4], 1 }
 0x510   :  { %1039 = vsyncpa [#allocation4 + $0x1], 1 }

</bundles_post_ra>
